<compile_context>
chip_gen: v7x
topology: tpu7x:2x2x1
jax: 0.10.0
libtpu: 0.0.40
codegen_flags: <defaults>
</compile_context>

<pallas_src>
import numpy as np
import jax
import jax.numpy as jnp
from jax.experimental import pallas as pl
from jax.experimental.pallas import tpu as pltpu

_MIB = 1024 * 1024


# ----------------------------------------------------------------------------
# Bilinear (align_corners=False, half-pixel, negative-src clamp) resampling as
# a dense per-axis weight matrix, using the *passed* scale factor for the
# coordinate mapping (recompute_scale_factor=None), matching PyTorch.
# ----------------------------------------------------------------------------
def _bilinear_weight_matrix(out_size: int, in_size: int, scale: float) -> np.ndarray:
    dst = np.arange(out_size, dtype=np.float64)
    src = (dst + 0.5) / scale - 0.5
    src = np.maximum(src, 0.0)                     # PyTorch clamps negative src
    i0 = np.floor(src).astype(np.int64)
    i0 = np.minimum(i0, in_size - 1)
    i1 = np.minimum(i0 + 1, in_size - 1)
    lam = (src - i0).astype(np.float32)
    w = np.zeros((out_size, in_size), dtype=np.float32)
    rows = np.arange(out_size)
    np.add.at(w, (rows, i0), 1.0 - lam)
    np.add.at(w, (rows, i1), lam)
    return w


# ----------------------------------------------------------------------------
# Generation-aware VMEM budget / limit and dtype-aware tiling helpers
# ----------------------------------------------------------------------------
def _vmem_capacity_bytes() -> int:
    try:
        cap = getattr(pltpu.get_tpu_info(), "vmem_capacity_bytes", None)
        if cap:
            return int(cap)
    except Exception:
        pass
    return 64 * _MIB            # conservative (v7x-sized) fallback


def _budget_and_limit():
    cap = _vmem_capacity_bytes()
    if cap >= 100 * _MIB:       # v5e / v6e: 128 MiB physical VMEM
        return 40 * _MIB, 96 * _MIB, cap
    return 22 * _MIB, 48 * _MIB, cap        # v7x: 64 MiB per TensorCore


def _chan_mult(itemsize: int) -> int:
    # Sub-32-bit dtypes pack along sublanes: round channel tiles accordingly.
    return {1: 32, 2: 16}.get(itemsize, 8)


def _pad128(n: int) -> int:
    return ((n + 127) // 128) * 128


def _largest_hw_tile(HW: int, max_elems: int) -> int:
    """Largest multiple-of-128 divisor of HW that is <= max_elems (HW % 128 == 0)."""
    if HW <= max_elems:
        return HW
    units = HW // 128
    limit = max(1, min(units, max_elems // 128))
    for d in range(limit, 0, -1):
        if units % d == 0:
            return d * 128
    return 128


def _pick_tiles_mul(C: int, HW: int, itemsize: int, budget: int):
    """(TC, THW) for the (B, C, HW) broadcast-multiply kernel.

    Double-buffered working set ~ (4*TC + 2) * THW * itemsize."""
    cm = _chan_mult(itemsize)

    def ws(tc, thw):
        return (4 * tc + 2) * thw * itemsize

    if ws(C, HW) <= budget:
        return C, HW                                   # whole (C, HW) slab fits
    hw_tileable = (HW % 128 == 0) and HW > 128

    if C > cm:
        # Channel tiling with full-HW (lane-dense, biggest) blocks.
        max_tc = int((budget // (HW * itemsize) - 2) // 4)
        tc = (max_tc // cm) * cm
        if tc >= cm:
            return int(min(tc, C)), HW

    # Channel tiling alone cannot meet the budget (or C is small): tile HW,
    # keeping the full channel dim when C is small (sublane efficiency).
    tc = C if C <= cm else cm
    if not hw_tileable:
        # TODO(synk): HW not a multiple of 128 — cannot tile the lane dim; the
        # caller raises vmem_limit_bytes instead of producing an illegal block.
        return int(tc), HW
    max_thw = int(budget // ((4 * tc + 2) * itemsize))
    return int(tc), _largest_hw_tile(HW, max(128, max_thw))


def _split_for_two_blocks(B, C, TC, HW, THW, cm):
    """Guarantee >=2 grid blocks so both v7x TensorCores get work."""
    if B * (-(-C // TC)) * (-(-HW // THW)) >= 2:
        return TC, THW
    if THW % 256 == 0:
        return TC, THW // 2
    if TC % (2 * cm) == 0:
        return TC // 2, THW
    return TC, THW


def _fused_per_channel_bytes(Ho, Wo, Hi, Wi, itemsize):
    """Conservative per-channel VMEM footprint of the fused kernel, including
    f32 intermediates and lane padding of narrow tiles."""
    hw = Ho * Wo
    att_blk = Hi * _pad128(Wi)
    io = 4 * hw * itemsize + 2 * att_blk * itemsize        # content+out, att (dbuf)
    inter = (Hi * _pad128(Wi)       # att cast to f32
             + Hi * _pad128(Wo)     # width-pass result
             + Ho * Hi              # broadcast height weights
             + Ho * _pad128(Wo)     # height-pass result
             + hw                   # interp, lane-dense
             ) * 4
    return io + inter + hw * itemsize                       # + sig


def _pick_tc_fused(C, Ho, Wo, Hi, Wi, itemsize, budget):
    cm = _chan_mult(itemsize)
    per = _fused_per_channel_bytes(Ho, Wo, Hi, Wi, itemsize)
    if C * per <= budget or C <= cm:
        return C
    tc = (int(budget // per) // cm) * cm
    if tc >= cm:
        return int(min(tc, C))
    # TODO(synk): add Ho-row tiling to the fused path when even `cm` channels
    # exceed the budget; for now the caller raises vmem_limit_bytes.
    return cm


def _split_tc_fused(B, C, TC, cm):
    if B * (-(-C // TC)) >= 2:
        return TC
    if TC % (2 * cm) == 0:
        return TC // 2
    return TC


# ----------------------------------------------------------------------------
# Kernel 1 (Ca == 1, common case): lane-dense tiled broadcast multiply.
#   content_ref: (1, TC, THW)   sig_ref: (1, 1, THW)   out_ref: (1, TC, THW)
# ----------------------------------------------------------------------------
def _mul_kernel(content_ref, sig_ref, out_ref):
    out_ref[...] = (content_ref[...] * sig_ref[...]).astype(out_ref.dtype)


# ----------------------------------------------------------------------------
# Kernel 2 (Ca == C): fused per-channel resample + sigmoid + multiply.
#   content_ref/out_ref: (1, TC, Ho*Wo)   att_ref: (1, TC, Hi, Wi)
#   wh_ref: (Ho, Hi) f32                  wwT_ref: (Wi, Wo) f32
# ----------------------------------------------------------------------------
def _fused_kernel(content_ref, att_ref, wh_ref, wwT_ref, out_ref):
    _, tc, hi, wi = att_ref.shape
    ho = wh_ref.shape[0]
    wo = wwT_ref.shape[1]

    att = att_ref[0].astype(jnp.float32)                       # (TC, Hi, Wi)

    # Width pass: one big (TC*Hi, Wi) @ (Wi, Wo) MXU matmul.
    t = jnp.dot(att.reshape(tc * hi, wi), wwT_ref[...],
                preferred_element_type=jnp.float32)             # (TC*Hi, Wo)
    t = t.reshape(tc, hi, wo)

    # Height pass: channel-batched (Ho, Hi) @ (Hi, Wo) matmuls.
    wh_b = jnp.broadcast_to(wh_ref[...], (tc, ho, hi))
    interp = jax.lax.dot_general(
        wh_b, t, (((2,), (1,)), ((0,), (0,))),
        preferred_element_type=jnp.float32)                     # (TC, Ho, Wo)

    # Lane-dense relayout so the store is an unmasked full-lane vst.
    sig = jax.nn.sigmoid(interp).reshape(tc, ho * wo).astype(out_ref.dtype)
    out_ref[0] = content_ref[0] * sig


# ----------------------------------------------------------------------------
# Wrappers
# ----------------------------------------------------------------------------
def _bk_msa_single_channel(content, att, wh, wwT):
    B, C, Ho, Wo = content.shape
    HW = Ho * Wo
    itemsize = content.dtype.itemsize
    budget, limit, cap = _budget_and_limit()
    cm = _chan_mult(itemsize)

    # Hoisted single-channel resample + sigmoid (O(B*HW) traffic — noise next
    # to the 2*B*C*HW multiply traffic for the typical C of this module).
    # TODO(synk): for very small C (<8) fuse this back into the kernel to save
    # the extra B*HW HBM round trip.
    prec = jax.lax.Precision.HIGHEST
    att_h = jnp.einsum("ph,bhw->bpw", wh, att[:, 0, :, :], precision=prec)
    att_up = jnp.einsum("bpw,wq->bpq", att_h, wwT, precision=prec)   # (B,Ho,Wo)
    sig = jax.nn.sigmoid(att_up).astype(content.dtype).reshape(B, 1, HW)

    content_f = content.reshape(B, C, HW)       # lane-dense layout

    TC, THW = _pick_tiles_mul(C, HW, itemsize, budget)
    TC, THW = _split_for_two_blocks(B, C, TC, HW, THW, cm)
    grid = (B, pl.cdiv(C, TC), pl.cdiv(HW, THW))

    ws_bytes = (4 * TC + 2) * THW * itemsize
    vmem_limit = int(min(cap, max(limit, 2 * ws_bytes + 2 * _MIB)))

    out = pl.pallas_call(
        _mul_kernel,
        out_shape=jax.ShapeDtypeStruct((B, C, HW), content.dtype),
        grid_spec=pltpu.PrefetchScalarGridSpec(
            num_scalar_prefetch=0,
            grid=grid,
            in_specs=[
                pl.BlockSpec((1, TC, THW), lambda b, c, t: (b, c, t)),
                pl.BlockSpec((1, 1, THW), lambda b, c, t: (b, 0, t)),
            ],
            out_specs=pl.BlockSpec((1, TC, THW), lambda b, c, t: (b, c, t)),
        ),
        compiler_params=pltpu.CompilerParams(
            dimension_semantics=("parallel", "parallel", "parallel"),
            vmem_limit_bytes=vmem_limit),
        cost_estimate=pl.CostEstimate(
            flops=B * C * HW,
            transcendentals=0,
            bytes_accessed=(2 * B * C * HW + B * HW) * itemsize),
    )(content_f, sig)
    return out.reshape(B, C, Ho, Wo)


def _bk_msa_per_channel(content, att, wh, wwT):
    B, C, Ho, Wo = content.shape
    _, _, Hi, Wi = att.shape
    HW = Ho * Wo
    itemsize = content.dtype.itemsize
    budget, limit, cap = _budget_and_limit()
    cm = _chan_mult(itemsize)

    TC = _pick_tc_fused(C, Ho, Wo, Hi, Wi, itemsize, budget)
    TC = _split_tc_fused(B, C, TC, cm)
    grid = (B, pl.cdiv(C, TC))

    per = _fused_per_channel_bytes(Ho, Wo, Hi, Wi, itemsize)
    need = TC * per + (Ho * _pad128(Hi) + Wi * _pad128(Wo)) * 4
    vmem_limit = int(min(cap, max(limit, 2 * need + 2 * _MIB)))

    content_f = content.reshape(B, C, HW)       # lane-dense output layout

    out = pl.pallas_call(
        _fused_kernel,
        out_shape=jax.ShapeDtypeStruct((B, C, HW), content.dtype),
        grid_spec=pltpu.PrefetchScalarGridSpec(
            num_scalar_prefetch=0,
            grid=grid,
            in_specs=[
                pl.BlockSpec((1, TC, HW), lambda b, c: (b, c, 0)),
                pl.BlockSpec((1, TC, Hi, Wi), lambda b, c: (b, c, 0, 0)),
                pl.BlockSpec((Ho, Hi), lambda b, c: (0, 0)),
                pl.BlockSpec((Wi, Wo), lambda b, c: (0, 0)),
            ],
            out_specs=pl.BlockSpec((1, TC, HW), lambda b, c: (b, c, 0)),
        ),
        compiler_params=pltpu.CompilerParams(
            dimension_semantics=("parallel", "parallel"),
            vmem_limit_bytes=vmem_limit),
        cost_estimate=pl.CostEstimate(
            flops=B * C * (HW + 2 * Hi * Wi * Wo + 2 * Hi * Wo * Ho),
            transcendentals=B * C * HW,
            bytes_accessed=(2 * B * C * HW + B * C * Hi * Wi) * itemsize),
    )(content_f, att, wh, wwT)
    return out.reshape(B, C, Ho, Wo)


def bk_multiscale_spatial_attention(content, att, scale_factor=(0.5, 0.5),
                                    size=None):
    """JAX/Pallas equivalent of BK_MultiScaleSpatialAttention.forward.

    `scale_factor` is the constructor argument; the module interpolates with
    [1/scale_factor[0], 1/scale_factor[1]] (size must be None: PyTorch forbids
    passing both size and scale_factor to F.interpolate)."""
    assert size is None
    B, C, Ho, Wo = content.shape
    Ba, Ca, Hi, Wi = att.shape
    assert B == Ba and (Ca == 1 or Ca == C), "expand_as needs att channels 1 or C"

    eff = (1.0 / scale_factor[0], 1.0 / scale_factor[1])
    out_h = int(np.floor(Hi * eff[0]))
    out_w = int(np.floor(Wi * eff[1]))
    # Reproduces the module's `assert content.size()[2:] == att.size()[2:]`.
    assert out_h == Ho and out_w == Wo, "interpolated att must match content HxW"

    wh = jnp.asarray(_bilinear_weight_matrix(Ho, Hi, eff[0]))        # (Ho, Hi)
    wwT = jnp.asarray(_bilinear_weight_matrix(Wo, Wi, eff[1]).T)     # (Wi, Wo)

    if Ca == 1:
        return _bk_msa_single_channel(content, att, wh, wwT)
    return _bk_msa_per_channel(content, att, wh, wwT)


# ----------------------------------------------------------------------------
# Self-check
# ----------------------------------------------------------------------------
if __name__ == "__main__":
    key = jax.random.PRNGKey(0)
    k1, k2, k3 = jax.random.split(key, 3)

    # Module constructed with scale_factor=(0.5, 0.5) -> att upsampled 2x.
    B, C, H, W = 2, 4, 16, 16
    Hi, Wi = 8, 8

    content = jax.random.normal(k1, (B, C, H, W), dtype=jnp.float32)

    wh_np = jnp.asarray(_bilinear_weight_matrix(H, Hi, 2.0))
    wwT_np = jnp.asarray(_bilinear_weight_matrix(W, Wi, 2.0).T)

    def reference(content, att):
        prec = jax.lax.Precision.HIGHEST
        tmp = jnp.einsum("ph,bchw->bcpw", wh_np, att, precision=prec)
        up = jnp.einsum("bcpw,wq->bcpq", tmp, wwT_np, precision=prec)
        return content * jax.nn.sigmoid(up)

    # Path 1: single-channel attention map (broadcast over C) — common case.
    # Resample runs in plain JAX at HIGHEST precision -> tight tolerance.
    att1 = jax.random.normal(k2, (B, 1, Hi, Wi), dtype=jnp.float32)
    out1 = jax.block_until_ready(
        bk_multiscale_spatial_attention(content, att1, scale_factor=(0.5, 0.5)))
    np.testing.assert_allclose(np.asarray(out1), np.asarray(reference(content, att1)),
                               atol=1e-5, rtol=1e-5)

    # Path 2: per-channel attention (expand_as with matching channel count).
    # In-kernel MXU matmuls run at default f32 precision (bf16 passes), the
    # reference at HIGHEST — loose tolerance still catches layout/weight bugs.
    attC = jax.random.normal(k3, (B, C, Hi, Wi), dtype=jnp.float32)
    out2 = jax.block_until_ready(
        bk_multiscale_spatial_attention(content, attC, scale_factor=(0.5, 0.5)))
    np.testing.assert_allclose(np.asarray(out2), np.asarray(reference(content, attC)),
                               atol=2e-2, rtol=2e-2)

    print("KERNEL_OK")
</pallas_src>

<mosaic_0001>
module attributes {stable_mosaic.version = 11 : i64} {
  func.func @_mul_kernel(%arg0: i32, %arg1: i32, %arg2: i32, %arg3: memref<1x4x256xf32, #tpu.memory_space<vmem>>, %arg4: memref<1x1x256xf32, #tpu.memory_space<vmem>>, %arg5: memref<1x4x256xf32, #tpu.memory_space<vmem>>) attributes {dimension_semantics = [#tpu.dimension_semantics<parallel>, #tpu.dimension_semantics<parallel>, #tpu.dimension_semantics<parallel>], iteration_bounds = array<i64: 2, 1, 1>, scalar_prefetch = 0 : i64, scratch_operands = 0 : i64, tpu.core_type = #tpu.core_type<tc>, window_params = [{transform_indices = @transform_0, window_bounds = array<i64: 1, 4, 256>}, {transform_indices = @transform_1, window_bounds = array<i64: 1, 1, 256>}, {transform_indices = @transform_2, window_bounds = array<i64: 1, 4, 256>}]} {
    %c0 = arith.constant 0 : index
    %c0_0 = arith.constant 0 : index
    %c0_1 = arith.constant 0 : index
    %0 = vector.load %arg3[%c0, %c0_0, %c0_1] : memref<1x4x256xf32, #tpu.memory_space<vmem>>, vector<1x4x256xf32>
    %c0_2 = arith.constant 0 : index
    %c0_3 = arith.constant 0 : index
    %c0_4 = arith.constant 0 : index
    %1 = vector.load %arg4[%c0_2, %c0_3, %c0_4] : memref<1x1x256xf32, #tpu.memory_space<vmem>>, vector<1x1x256xf32>
    %2 = vector.broadcast %1 : vector<1x1x256xf32> to vector<1x4x256xf32>
    %3 = arith.mulf %0, %2 : vector<1x4x256xf32>
    %c0_5 = arith.constant 0 : index
    %c0_6 = arith.constant 0 : index
    %c0_7 = arith.constant 0 : index
    %4 = vector.load %arg5[%c0_5, %c0_6, %c0_7] : memref<1x4x256xf32, #tpu.memory_space<vmem>>, vector<1x4x256xf32>
    tpu.vector_store %arg5[%c0_5, %c0_6, %c0_7], %3 {strides = array<i32>} : memref<1x4x256xf32, #tpu.memory_space<vmem>>, vector<1x4x256xf32>,
    return
  }
  func.func @transform_0(%arg0: i32, %arg1: i32, %arg2: i32) -> (i32, i32, i32) {
    %c0_i32 = arith.constant 0 : i32
    return %arg0, %arg1, %arg2 : i32, i32, i32
  }
  func.func @transform_1(%arg0: i32, %arg1: i32, %arg2: i32) -> (i32, i32, i32) {
    %c0_i32 = arith.constant 0 : i32
    %c0_i32_0 = arith.constant 0 : i32
    return %arg0, %c0_i32, %arg2 : i32, i32, i32
  }
  func.func @transform_2(%arg0: i32, %arg1: i32, %arg2: i32) -> (i32, i32, i32) {
    %c0_i32 = arith.constant 0 : i32
    return %arg0, %arg1, %arg2 : i32, i32, i32
  }
}

</mosaic_0001>

<bundles_post_ra>
// kernel: tpu_custom_call.1
= control target key start
LH: loop header
LB: loop body
LE: loop exit
PB: predicated region body
PF: predicated region fallthrough
CT: control target
= control target key end

     0   :  { %7 = vsyncpa [#allocation3], 0  ;;  %s857_s0 = inlined_call_operand.hbm [shape: f32[2,4,256], index: 0, kind: input, shape index: {}]   ;;  %s858_s1 = inlined_call_operand.hbm [shape: f32[2,1,256], index: 1, kind: input, shape index: {}]   ;;  %s859_s2 = inlined_call_operand.hbm [shape: f32[2,4,256], index: 2, kind: output, shape index: {}]  }
   0x1   :  { %9 = vsyncpa [#allocation3 + $0x1], 0 }
   0x2   :  { %10 = vsyncpa [#allocation6], 0 }
   0x3   :  { %12 = vsyncpa [#allocation6 + $0x1], 0 }
   0x4   :  { %13 = vsyncpa [#allocation4], 0 }
   0x5   :  { %15 = vsyncpa [#allocation4 + $0x1], 0  ;;  %s642_s9 = smov 0   ;;  %s644_s10 = smov 0  }
   0x6   :  { %s646_s11 = smov 0   ;;  %s648_s12 = smov 0  }
   0x7   :  { %s650_s13 = smov 0   ;;  %s652_s14 = smov 0  }
   0x8 LB: > { %s387_s15 = sadd.s32 4294967295, %s622_s14   ;;  %s388_s16 = sadd.s32 4294967294, %s622_s14   ;;  %s622_s14 = sphi %s652_s14, %s21_s14   ;;  %s618_s13 = sphi %s650_s13, %s879_s13   ;;  %s614_s12 = sphi %s648_s12, %s878_s12   ;;  %s610_s11 = sphi %s646_s11, %s877_s11   ;;  %s606_s10 = sphi %s644_s10, %s876_s10   ;;  %s602_s9 = sphi %s642_s9, %s875_s9  }
   0x9   : > { %s40_s17 = sadd.s32 1, %s618_s13  ;;  %s51_s18 = sadd.s32 1, %s610_s11 }
   0xa   : > { %p42_p0 = scmp.ge.s32.totalorder %s40_s17, 2  ;;  %p58_p1 = scmp.ne.s32.totalorder %s610_s11, %s606_s10 }
   0xb   : > { %p59_p2 = scmp.eq.s32.totalorder %s622_s14, 0  ;;  %p64_p3 = scmp.ne.s32.totalorder %s606_s10, %s602_s9 }
   0xc   : > { %s881_s17 = smov (%p42_p0, %s40_s17), 0  ;;  %p65_p5 = scmp.eq.s32.totalorder %s387_s15, 0 }
   0xd   : > { %p683_p4 = por %p59_p2, %p58_p1  ;;  %s44_s20 = ssub.s32 %s618_s13, %s881_s17 }
   0xe   : > { %p120_p6 = scmp.eq.s32.totalorder %s387_s15, 1  ;;  %p49_p7 = scmp.eq.s32.totalorder %s44_s20, 0 }
   0xf   : > { %p689_p8 = por %p65_p5, %p64_p3  ;;  %p126_p10 = scmp.eq.s32.totalorder %s388_s16, 1 }
  0x10   : > { %p693_p9 = por %p120_p6, %p58_p1  ;;  %p426_p13 = scmp.lt.s32.totalorder %s622_s14, 2 }
  0x11   : > { %s863_s21 = scalar_select %p689_p8, 1, 0 }
  0x12   : > { %s864_s22 = scalar_select %p693_p9, 1, 0 }
  0x13   : > { %s698_s23 = scalar_select %p49_p7, %s610_s11, %s51_s18  }
  0x14   : > { %p700_p11 = por %p126_p10, %p64_p3  ;;  %s707_s25 = sand.u32 1, %s610_s11  }
  0x15   : > { %s391_s26 = sshll.u32 %s707_s25, 3  ;;  %s406_s27 = sshll.u32 %s618_s13, 7 }
  0x16   : > { %s865_s24 = scalar_select %p700_p11, 1, 0 }
  0x17   : > { %s714_s30 = scalar_lea.hbm %s857_s0, %s406_s27  ;;  %s150_s3 = scalar_lea.vmem [#allocation2], %s391_s26 }
  0x18   : > { %s162_s4 = sshll.u32 %s150_s3, 4  ;;  %p720_p0 = pnand %p426_p13, %p683_p4  ;;  %s716_s4 = int_to_ptr.vmem [resolvable:$true] %s162_s4 }
  0x19   : > { %s147_s6 = scalar_lea.sflag [#allocation3], %s707_s25  ;;  %s476_s7 = scalar_lea.hbm %s714_s30, 128 }
  0x1a   : > { %p477_p3 = scmp.ne.s32.totalorder %s714_s30, %s476_s7  ;;  %p478_p5 = pneg %p720_p0 }
  0x1b   : > { %s481_s16 = scalar_lea.hbm %s857_s0, 256  ;;  %p482_p4 = scmp.lt.u32.totalorder %s714_s30, %s857_s0 }
  0x1c   : > { %p479_p6 = pnand %p478_p5, %p477_p3  ;;  %p483_p10 = scmp.lt.u32.totalorder %s481_s16, %s476_s7 }
  0x1d   : > { %p485_p12 = scmp.lt.u32.totalorder %s476_s7, %s714_s30 }
  0x1e   : > { %p480_p7 = pneg %p479_p6  ;;  %p484_p13 = por %p483_p10, %p482_p4 }
  0x20   : > { %p486_p1 = por %p485_p12, %p484_p13 }
  0x22   : > { %p487_p2 = pnand %p486_p1, %p480_p7 }
  0x24   : > { %490 = shalt.err (!%p487_p2)
}
  0x25   : > { %s491_s20 = scalar_lea.vmem %s716_s4, 128  ;;  %s624_s26 = smov [#allocation2]  }
  0x26   : > { %p492_p3 = scmp.ne.s32.totalorder %s716_s4, %s491_s20  ;;  %s496_s27 = sshll.u32 %s624_s26, 4  ;;  %s497_s27 = int_to_ptr.vmem [resolvable:$false] %s496_s27 }
  0x27   : > { %s498_s28 = scalar_lea.vmem %s497_s27, 256  ;;  %p499_p9 = scmp.lt.s32.totalorder %s716_s4, %s497_s27 }
  0x28   : > { %p494_p6 = pnand %p492_p3, %p478_p5  ;;  %p500_p4 = scmp.lt.s32.totalorder %s498_s28, %s491_s20 }
  0x2a   : > { %p495_p11 = pneg %p494_p6  ;;  %p501_p10 = por %p500_p4, %p499_p9 }
  0x2c   : > { %p502_p12 = pnand %p501_p10, %p495_p11 }
  0x2e   : > { %505 = shalt.err (!%p502_p12)
}
  0x2f   : > { %418 = dma.hbm_to_vmem [thread:$0]  (!%p720_p0), %s714_s30, 128, %s716_s4, %s147_s6  }
  0x30   : > { %p867_p1 = scmp.lt.s32.totalorder %s622_s14, 3  ;;  %p868_p2 = scmp.ge.s32.totalorder %s622_s14, 1 }
  0x31   : > { %s394_s3 = sshll.u32 %s707_s25, 1  ;;  %s407_s7 = sshll.u32 %s618_s13, 5 }
  0x32   : > { %p756_p7 = pnand %p868_p2, %p867_p1  ;;  %s765_s16 = scalar_lea.hbm %s858_s1, %s407_s7 }
  0x33   : > { %s173_s18 = scalar_lea.vmem [#allocation5], %s394_s3  ;;  %s170_s30 = scalar_lea.sflag [#allocation6], %s707_s25 }
  0x34   : > { %s869_s29 = scalar_select %p756_p7, 1, 0 }
  0x35   : > { %s183_s19 = sshll.u32 %s173_s18, 4  ;;  %s506_s4 = scalar_lea.hbm %s765_s16, 32  ;;  %s184_s19 = int_to_ptr.vmem [resolvable:$true] %s183_s19 }
  0x36   : > { %p507_p9 = scmp.ne.s32.totalorder %s765_s16, %s506_s4  ;;  %s511_s26 = scalar_lea.hbm %s858_s1, 64 }
  0x37   : > { %p512_p3 = scmp.lt.u32.totalorder %s765_s16, %s858_s1  ;;  %p513_p6 = scmp.lt.u32.totalorder %s511_s26, %s506_s4 }
  0x38   : > { %p509_p11 = pnand %p507_p9, %p478_p5  ;;  %p515_p10 = scmp.lt.u32.totalorder %s506_s4, %s765_s16 }
  0x39   : > { %p514_p4 = por %p513_p6, %p512_p3 }
  0x3a   : > { %p510_p13 = pneg %p509_p11 }
  0x3b   : > { %p516_p12 = por %p515_p10, %p514_p4 }
  0x3d   : > { %p517_p1 = pnand %p516_p12, %p510_p13 }
  0x3f   : > { %520 = shalt.err (!%p517_p1)
}
  0x40   : > { %s521_s25 = scalar_lea.vmem %s184_s19, 32  ;;  %s625_s3 = smov [#allocation5]  }
  0x41   : > { %p522_p2 = scmp.ne.s32.totalorder %s184_s19, %s521_s25  ;;  %s526_s7 = sshll.u32 %s625_s3, 4  ;;  %s527_s7 = int_to_ptr.vmem [resolvable:$false] %s526_s7 }
  0x42   : > { %s528_s8 = scalar_lea.vmem %s527_s7, 64  ;;  %p529_p8 = scmp.lt.s32.totalorder %s184_s19, %s527_s7 }
  0x43   : > { %p524_p9 = pnand %p522_p2, %p478_p5  ;;  %p530_p7 = scmp.lt.s32.totalorder %s528_s8, %s521_s25 }
  0x45   : > { %p525_p11 = pneg %p524_p9  ;;  %p531_p3 = por %p530_p7, %p529_p8 }
  0x47   : > { %p532_p6 = pnand %p531_p3, %p525_p11 }
  0x49   : > { %535 = shalt.err (!%p532_p6)
}
  0x4a   : > { %421 = dma.hbm_to_vmem [thread:$0]  (!%p720_p0), %s765_s16, 32, %s184_s19, %s170_s30  }
  0x4b   : > { %p870_p13 = scmp.ne.s32.totalorder %s869_s29, 0 }
  0x4c   : > { %s790_s15 = sand.u32 (!%p870_p13), 1, %s606_s10   ;;  %p871_p5 = scmp.ne.s32.totalorder (!%p870_p13), %s863_s21, 0 }
  0x4d   : > { %192 = sbr.rel (%p870_p13) target bundleno = 114 (0x72), region = 28  ;;  %s398_s18 = sshll.u32 (!%p870_p13), %s790_s15, 3 }
  0x4e   : > { %s195_s4 = scalar_lea.sflag (!%p870_p13), [#allocation3], %s790_s15  ;;  %s198_s6 = scalar_lea.vmem (!%p870_p13), [#allocation2], %s398_s18 }
  0x54   : > { %589 = dma.done.wait (%p871_p5), %s195_s4, 128  }
  0x55   : > { %591 = vsyncadd (%p871_p5), %s195_s4, 4294967168  ;;  %s399_s5 = sshll.u32 %s790_s15, 1  ;;  %s204_s29 = scalar_lea.sflag [#allocation6], %s790_s15 }
  0x56   : > { %s207_s16 = scalar_lea.vmem [#allocation5], %s399_s5 }
  0x57   : > { %593 = dma.done.wait (%p871_p5), %s204_s29, 32  }
  0x58   : > { %595 = vsyncadd (%p871_p5), %s204_s29, 4294967264  ;;  %v239_v0 = vlaneseq  ;;  %v237_v4 = vld [vmem:[%s207_s16] sm:$0x3]  ;;  %v236_v7 = vld [vmem:[%s198_s6] sm:$0xff]  ;;  %s232_s19 = scalar_lea.vmem [#allocation7], %s398_s18  ;;  %s408_s20 = sshll.u32 %s614_s12, 7 }
  0x59   : > { %s270_s30 = sshll.u32 %s232_s19, 4  ;;  %s810_s27 = scalar_lea.hbm %s859_s2, %s408_s20  ;;  %s805_s30 = int_to_ptr.vmem [resolvable:$true] %s270_s30 }
  0x5a   : > { %v240_v1 = vshrl.u32 %v239_v0, 7  ;;  %s252_s28 = scalar_lea.sflag [#allocation4], %s790_s15  ;;  %s536_s25 = scalar_lea.vmem %s805_s30, 128 }
  0x5b   : > { %p537_p8 = scmp.ne.s32.totalorder %s805_s30, %s536_s25  ;;  %p872_p0 = scmp.ne.s32.totalorder %s864_s22, 0 }
  0x5c   : > { %v241_v2 = vsub.s32 0, %v240_v1  ;;  %v245_v3 = vsub.s32 1, %v240_v1  ;;  %s626_s12 = smov [#allocation7]  }
  0x5d   : > { %p538_p7 = pnand %p537_p8, %p872_p0  ;;  %s540_s3 = sshll.u32 %s626_s12, 4  ;;  %s541_s3 = int_to_ptr.vmem [resolvable:$false] %s540_s3 }
  0x5e   : > { %v242_v5 = vrot.slane %v237_v4, %v241_v2  ;;  %v246_v6 = vrot.slane %v237_v4, %v245_v3  ;;  %s542_s7 = scalar_lea.vmem %s541_s3, 256  ;;  %p543_p10 = scmp.lt.s32.totalorder %s805_s30, %s541_s3 }
  0x5f   : > { %p539_p4 = pneg %p538_p7  ;;  %p544_p12 = scmp.lt.s32.totalorder %s542_s7, %s536_s25 }
  0x60   : > { %v247_v8 = vcombine.low %v242_v5, %v246_v6 }
  0x61   : > { %p545_p1 = por %p544_p12, %p543_p10 }
  0x62   : > { %v249_v9 = vmul.f32 %v247_v8, %v236_v7 }
  0x63   : > { %p546_p2 = pnand %p545_p1, %p539_p4 }
  0x64   : > { %250 = vst [vmem:[%s232_s19] sm:$0xff] %v249_v9 }
  0x65   : > { %549 = shalt.err (!%p546_p2)
}
  0x66   : > { %s550_s8 = scalar_lea.hbm %s810_s27, 128  ;;  %s554_s4 = scalar_lea.hbm %s859_s2, 256 }
  0x67   : > { %p551_p9 = scmp.ne.s32.totalorder %s810_s27, %s550_s8  ;;  %p555_p6 = scmp.lt.u32.totalorder %s810_s27, %s859_s2 }
  0x68   : > { %p556_p13 = scmp.lt.u32.totalorder %s554_s4, %s550_s8  ;;  %p558_p8 = scmp.lt.u32.totalorder %s550_s8, %s810_s27 }
  0x69   : > { %p552_p11 = pnand %p551_p9, %p872_p0 }
  0x6a   : > { %p557_p5 = por %p556_p13, %p555_p6 }
  0x6b   : > { %p553_p3 = pneg %p552_p11 }
  0x6c   : > { %p559_p7 = por %p558_p8, %p557_p5 }
  0x6e   : > { %p560_p4 = pnand %p559_p7, %p553_p3 }
  0x70   : > { %563 = shalt.err (!%p560_p4)
}
  0x71   : > { %413 = dma.vmem_to_hbm [thread:$0]  (%p872_p0), %s805_s30, 128, %s810_s27, %s252_s28  }
  0x72 PF: > { %s282_s29 = sand.u32 1, %s602_s9   ;;  %p873_p10 = scmp.ne.s32.totalorder %s865_s24, 0 }
  0x73   : > { %p874_p12 = scmp.ge.s32.totalorder %s622_s14, 2  ;;  %s283_s16 = scalar_lea.sflag [#allocation4], %s282_s29 }
  0x75   : > { %p423_p1 = pnand %p874_p12, %p873_p10 }
  0x77   : > { %597 = dma.done.wait (!%p423_p1), %s283_s16, 128  }
  0x78   : > { %599 = vsyncadd (!%p423_p1), %s283_s16, 4294967168  ;;  %s21_s14 = sadd.s32 1, %s622_s14   ;;  %s875_s9 = smov %s606_s10 }
  0x79   : > { %p18_p2 = scmp.ge.s32.totalorder %s21_s14, 4   ;;  %s876_s10 = smov %s610_s11 }
  0x7a   : > { %s877_s11 = smov %s698_s23  ;;  %s878_s12 = smov %s618_s13 }
  0x7b   : > { %s879_s13 = smov %s881_s17  ;;  %20 = sbr.rel (!%p18_p2) target bundleno = 8 (0x8), region = 86 }
  0x82   :  { %288 = vsyncpa [#allocation3], 1 }
  0x83   :  { %290 = vsyncpa [#allocation3 + $0x1], 1 }
  0x84   :  { %291 = vsyncpa [#allocation6], 1 }
  0x85   :  { %293 = vsyncpa [#allocation6 + $0x1], 1 }
  0x86   :  { %294 = vsyncpa [#allocation4], 1 }
  0x87   :  { %296 = vsyncpa [#allocation4 + $0x1], 1 }

</bundles_post_ra>
